<compile_context>
chip_gen: v5e
topology: v5e:2x2
jax: 0.10.0
libtpu: 0.0.40
codegen_flags: <defaults>
</compile_context>

<pallas_src>
import functools

import jax
import jax.numpy as jnp
from jax.experimental import pallas as pl
from jax.experimental.pallas import tpu as pltpu

_LANE = 128


def _round_up(x: int, m: int) -> int:
    return ((x + m - 1) // m) * m


def _pad2d(a, rows: int, cols: int):
    r, c = a.shape
    return jnp.pad(a, ((0, rows - r), (0, cols - c)))


# --------------------------------------------------------------------------
# Generation-dependent budgets / tile caps
# --------------------------------------------------------------------------
def _hw_config():
    """(working_set_budget, vmem_limit_bytes, tm_cap, tk_cap)."""
    try:
        kind = jax.devices()[0].device_kind.lower()
    except Exception:  # pragma: no cover
        kind = ""
    if ("v5" in kind) or ("v6" in kind):
        # 128 MiB physical VMEM: mem-bound -> biggest DMA chunks we can afford.
        return 96 * 1024 * 1024, 100 * 1024 * 1024, 2048, 2048
    # v7x (64 MiB physical VMEM) or unknown: stay well under 64 MiB.
    return 40 * 1024 * 1024, 48 * 1024 * 1024, 1024, 2048


def _pick_tiles(n: int, tm_cap: int, tk_cap: int):
    """Pick (n_padded, tm, tk); pad N up to the tile instead of the reverse."""
    n128 = _round_up(max(n, 1), _LANE)
    super_t = _LANE
    for t in (2048, 1024, 512, 256):
        # Accept at most ~12.5% row padding (Ahat grows quadratically with N).
        if t <= max(tm_cap, tk_cap) and _round_up(n128, t) - n128 <= n128 // 8:
            super_t = t
            break
    n_p = _round_up(n128, super_t)
    tm = min(tm_cap, super_t, n_p)
    tk = min(tk_cap, super_t, n_p)
    # Megacore: keep at least 2 row tiles when the graph is big enough.
    if n_p >= 2 * _LANE and n_p // tm < 2:
        tm = n_p // 2
    return n_p, tm, tk


def _plan_pass(n_p, tm, tk, fin, fout, out_elem_bytes, acc_cols, const_bytes,
               budget):
    """Shrink tiles / drop RHS residency until the working set fits VMEM."""
    resident = True
    while True:
        rhs_bytes = (2 * n_p * fin * 2) if resident else (2 * tk * fin * 2)
        ws = (2 * tm * tk * 2) + rhs_bytes + (2 * tm * fout * out_elem_bytes)
        ws += tm * acc_cols * 4
        ws += 2 * const_bytes
        if ws <= budget:
            return tm, tk, resident
        if resident and n_p > tk:
            resident = False
        elif tk > _LANE:
            tk //= 2
        elif tm > _LANE:
            tm //= 2
        else:
            return tm, tk, resident


# --------------------------------------------------------------------------
# Kernels
# --------------------------------------------------------------------------
def _rhs_block(rhs_ref, k, tk, resident):
    """K-step slab of the second matmul operand (X or P)."""
    if resident:
        start = pl.multiple_of(k * tk, _LANE)
        return rhs_ref[pl.ds(start, tk), :]
    return rhs_ref[...]


def _agg_w1_relu_w2_kernel(ahat_ref, x_ref, w1_ref, b1_ref, w2_ref, o_ref,
                           acc_ref, *, tk, rhs_resident):
    """acc += Ahat_tile @ X over K; finalize: (relu(acc@W1 + b1)) @ W2."""
    k = pl.program_id(1)

    @pl.when(k == 0)
    def _():
        acc_ref[...] = jnp.zeros_like(acc_ref)

    x_blk = _rhs_block(x_ref, k, tk, rhs_resident)
    acc_ref[...] += jnp.dot(ahat_ref[...], x_blk,
                            preferred_element_type=jnp.float32)

    @pl.when(k == pl.num_programs(1) - 1)
    def _():
        h = jnp.dot(acc_ref[...].astype(jnp.bfloat16), w1_ref[...],
                    preferred_element_type=jnp.float32)
        h = jnp.maximum(h + b1_ref[...], 0.0)
        p = jnp.dot(h.astype(jnp.bfloat16), w2_ref[...],
                    preferred_element_type=jnp.float32)
        o_ref[...] = p.astype(o_ref.dtype)


def _agg_w_act_kernel(ahat_ref, x_ref, w_ref, b_ref, o_ref, acc_ref, *, tk,
                      rhs_resident, relu):
    """acc += Ahat_tile @ X over K; finalize: act(acc @ W + b)."""
    k = pl.program_id(1)

    @pl.when(k == 0)
    def _():
        acc_ref[...] = jnp.zeros_like(acc_ref)

    x_blk = _rhs_block(x_ref, k, tk, rhs_resident)
    acc_ref[...] += jnp.dot(ahat_ref[...], x_blk,
                            preferred_element_type=jnp.float32)

    @pl.when(k == pl.num_programs(1) - 1)
    def _():
        y = jnp.dot(acc_ref[...].astype(jnp.bfloat16), w_ref[...],
                    preferred_element_type=jnp.float32) + b_ref[...]
        if relu:
            y = jnp.maximum(y, 0.0)
        o_ref[...] = y.astype(o_ref.dtype)


def _agg_bias_kernel(ahat_ref, p_ref, b_ref, o_ref, *, tk, rhs_resident):
    """o (f32, resident across K) = b + sum_k Ahat_tile @ P_k. No scratch."""
    k = pl.program_id(1)

    @pl.when(k == 0)
    def _():
        o_ref[...] = jnp.broadcast_to(b_ref[...], o_ref.shape)

    p_blk = _rhs_block(p_ref, k, tk, rhs_resident)
    o_ref[...] += jnp.dot(ahat_ref[...], p_blk,
                          preferred_element_type=jnp.float32)


# --------------------------------------------------------------------------
# pallas_call wrapper
# --------------------------------------------------------------------------
def _aggregate(kernel, ahat, rhs, extras, *, n_p, tm, tk, fout, out_dtype,
               rhs_resident, acc_cols, vmem_limit):
    fin = rhs.shape[1]
    in_specs = [pl.BlockSpec((tm, tk), lambda i, k: (i, k))]
    if rhs_resident:
        in_specs.append(pl.BlockSpec((n_p, fin), lambda i, k: (0, 0)))
    else:
        in_specs.append(pl.BlockSpec((tk, fin), lambda i, k: (k, 0)))
    for e in extras:
        in_specs.append(pl.BlockSpec(e.shape, lambda i, k: (0, 0)))
    scratch = [pltpu.VMEM((tm, acc_cols), jnp.float32)] if acc_cols else []

    return pl.pallas_call(
        kernel,
        out_shape=jax.ShapeDtypeStruct((n_p, fout), out_dtype),
        grid_spec=pltpu.PrefetchScalarGridSpec(
            num_scalar_prefetch=0,
            grid=(n_p // tm, n_p // tk),
            in_specs=in_specs,
            out_specs=pl.BlockSpec((tm, fout), lambda i, k: (i, 0)),
            scratch_shapes=scratch,
        ),
        compiler_params=pltpu.CompilerParams(
            dimension_semantics=("parallel", "arbitrary"),
            vmem_limit_bytes=vmem_limit,
        ),
    )(ahat, rhs, *extras)


# --------------------------------------------------------------------------
# Graph preprocessing (JAX glue: scatter-add has no clean Pallas equivalent).
# --------------------------------------------------------------------------
def build_normalized_adjacency(edge_index: jnp.ndarray, num_nodes: int):
    """Dense Ahat = D^{-1/2}(A + I_remaining)D^{-1/2} (PyG gcn_norm style:
    self-loops are only added for nodes that do not already have one)."""
    src = edge_index[0]
    dst = edge_index[1]
    a = jnp.zeros((num_nodes, num_nodes), jnp.float32).at[dst, src].add(1.0)
    has_loop = jnp.diag(a) > 0
    a = a + jnp.diag(jnp.where(has_loop, 0.0, 1.0))
    deg = a.sum(axis=1)
    deg_safe = jnp.where(deg > 0, deg, 1.0)
    dinv = jnp.where(deg > 0, 1.0 / jnp.sqrt(deg_safe), 0.0)
    return dinv[:, None] * a * dinv[None, :]


# --------------------------------------------------------------------------
# Encoder forward
# --------------------------------------------------------------------------
def encoder_forward(x, edge_index, w1, b1, w2, b2):
    """x: (N, in_channels) float32; edge_index: (2, E) int32."""
    n, in_ch = x.shape
    hidden = w1.shape[1]
    out_ch = w2.shape[1]

    in_p = _round_up(in_ch, _LANE)
    hid_p = _round_up(hidden, _LANE)
    out_p = _round_up(out_ch, _LANE)

    budget, vmem_limit, tm_cap, tk_cap = _hw_config()
    n_p, tm0, tk0 = _pick_tiles(n, tm_cap, tk_cap)

    # TODO(synk): for large sparse graphs, replace the dense Ahat with a
    # scalar-prefetch SpMM (PrefetchScalarGridSpec gather over neighbor rows);
    # the dense N^2 bf16 Ahat is the asymptotic HBM / capacity limiter.
    ahat = build_normalized_adjacency(edge_index, n)
    ahat_p = _pad2d(ahat, n_p, n_p).astype(jnp.bfloat16)
    x_p = _pad2d(x.astype(jnp.float32), n_p, in_p).astype(jnp.bfloat16)
    w1_b = _pad2d(w1, in_p, hid_p).astype(jnp.bfloat16)
    w2_b = _pad2d(w2, hid_p, out_p).astype(jnp.bfloat16)
    b1_r = jnp.pad(b1, (0, hid_p - hidden)).reshape(1, hid_p).astype(jnp.float32)
    b2_r = jnp.pad(b2, (0, out_p - out_ch)).reshape(1, out_p).astype(jnp.float32)

    # Ordering decision on PADDED widths; ties prefer the fused path.
    fuse_w2 = out_p <= hid_p

    # TODO(synk): PReLU / leaky_relu activation variants not wired in
    # (module default is ReLU).
    if fuse_w2:
        # Pass 1: P = relu((Ahat @ X) @ W1 + b1) @ W2   (bf16, width out_p)
        c1 = (w1_b.size + w2_b.size) * 2 + b1_r.size * 4
        tm, tk, res = _plan_pass(n_p, tm0, tk0, in_p, out_p, 2, in_p, c1, budget)
        p = _aggregate(
            functools.partial(_agg_w1_relu_w2_kernel, tk=tk, rhs_resident=res),
            ahat_p, x_p, (w1_b, b1_r, w2_b),
            n_p=n_p, tm=tm, tk=tk, fout=out_p, out_dtype=jnp.bfloat16,
            rhs_resident=res, acc_cols=in_p, vmem_limit=vmem_limit)
        # Pass 2: Y = Ahat @ P + b2   (f32 accumulation directly in the output)
        c2 = b2_r.size * 4
        tm, tk, res = _plan_pass(n_p, tm0, tk0, out_p, out_p, 4, 0, c2, budget)
        y = _aggregate(
            functools.partial(_agg_bias_kernel, tk=tk, rhs_resident=res),
            ahat_p, p, (b2_r,),
            n_p=n_p, tm=tm, tk=tk, fout=out_p, out_dtype=jnp.float32,
            rhs_resident=res, acc_cols=0, vmem_limit=vmem_limit)
    else:
        # out wider than hidden: aggregate H first, keep W2 in pass 2 finalize.
        c1 = w1_b.size * 2 + b1_r.size * 4
        tm, tk, res = _plan_pass(n_p, tm0, tk0, in_p, hid_p, 2, in_p, c1, budget)
        h = _aggregate(
            functools.partial(_agg_w_act_kernel, tk=tk, rhs_resident=res,
                              relu=True),
            ahat_p, x_p, (w1_b, b1_r),
            n_p=n_p, tm=tm, tk=tk, fout=hid_p, out_dtype=jnp.bfloat16,
            rhs_resident=res, acc_cols=in_p, vmem_limit=vmem_limit)
        c2 = w2_b.size * 2 + b2_r.size * 4
        tm, tk, res = _plan_pass(n_p, tm0, tk0, hid_p, out_p, 4, hid_p, c2, budget)
        y = _aggregate(
            functools.partial(_agg_w_act_kernel, tk=tk, rhs_resident=res,
                              relu=False),
            ahat_p, h, (w2_b, b2_r),
            n_p=n_p, tm=tm, tk=tk, fout=out_p, out_dtype=jnp.float32,
            rhs_resident=res, acc_cols=hid_p, vmem_limit=vmem_limit)

    return y[:n, :out_ch]


def init_params(key, in_channels, hidden, out_channels):
    """Deterministic synthetic parameters (Glorot-ish weights, zero bias)."""
    k1, k2 = jax.random.split(key)
    s1 = (6.0 / (in_channels + hidden)) ** 0.5
    s2 = (6.0 / (hidden + out_channels)) ** 0.5
    w1 = jax.random.uniform(k1, (in_channels, hidden), jnp.float32, -s1, s1)
    w2 = jax.random.uniform(k2, (hidden, out_channels), jnp.float32, -s2, s2)
    b1 = jnp.zeros((hidden,), jnp.float32)
    b2 = jnp.zeros((out_channels,), jnp.float32)
    return w1, b1, w2, b2


if __name__ == "__main__":
    key = jax.random.PRNGKey(0)
    k_x, k_e, k_p = jax.random.split(key, 3)

    N = 16            # number of graph nodes
    IN_CH = 8
    HIDDEN = 32
    OUT_CH = 16
    E = 40            # number of directed edges

    x = jax.random.normal(k_x, (N, IN_CH), jnp.float32)
    edge_index = jax.random.randint(k_e, (2, E), 0, N, dtype=jnp.int32)

    w1, b1, w2, b2 = init_params(k_p, IN_CH, HIDDEN, OUT_CH)

    out = encoder_forward(x, edge_index, w1, b1, w2, b2)
    out = jax.block_until_ready(out)

    # Pure-JAX f32 reference (kernel uses bf16 MXU inputs -> looser tolerance).
    ahat = build_normalized_adjacency(edge_index, N)
    ref = ahat @ jnp.maximum(ahat @ (x @ w1) + b1, 0.0) @ w2 + b2
    assert out.shape == (N, OUT_CH)
    assert jnp.allclose(out, ref, atol=5e-2, rtol=5e-2), (
        float(jnp.max(jnp.abs(out - ref))))

    print("KERNEL_OK")
</pallas_src>

<mosaic_0001>
module attributes {stable_mosaic.version = 11 : i64} {
  func.func @_agg_w1_relu_w2_kernel(%arg0: i32, %arg1: i32, %arg2: memref<128x128xbf16, #tpu.memory_space<vmem>>, %arg3: memref<128x128xbf16, #tpu.memory_space<vmem>>, %arg4: memref<128x128xbf16, #tpu.memory_space<vmem>>, %arg5: memref<1x128xf32, #tpu.memory_space<vmem>>, %arg6: memref<128x128xbf16, #tpu.memory_space<vmem>>, %arg7: memref<128x128xbf16, #tpu.memory_space<vmem>>, %arg8: memref<128x128xf32, #tpu.memory_space<vmem>>) attributes {dimension_semantics = [#tpu.dimension_semantics<parallel>, #tpu.dimension_semantics<arbitrary>], iteration_bounds = array<i64: 1, 1>, scalar_prefetch = 0 : i64, scratch_operands = 1 : i64, tpu.core_type = #tpu.core_type<tc>, window_params = [{transform_indices = @transform_0, window_bounds = array<i64: 128, 128>}, {pipeline_mode = #tpu.pipeline_mode<synchronous>, transform_indices = @transform_1, window_bounds = array<i64: 128, 128>}, {pipeline_mode = #tpu.pipeline_mode<synchronous>, transform_indices = @transform_2, window_bounds = array<i64: 128, 128>}, {pipeline_mode = #tpu.pipeline_mode<synchronous>, transform_indices = @transform_3, window_bounds = array<i64: 1, 128>}, {pipeline_mode = #tpu.pipeline_mode<synchronous>, transform_indices = @transform_4, window_bounds = array<i64: 128, 128>}, {transform_indices = @transform_5, window_bounds = array<i64: 128, 128>}]} {
    %c0_i32 = arith.constant 0 : i32
    %0 = arith.cmpi eq, %arg1, %c0_i32 : i32
    %1 = arith.extui %0 : i1 to i32
    %c0_i32_0 = arith.constant 0 : i32
    %2 = arith.cmpi ne, %1, %c0_i32_0 : i32
    scf.if %2 {
      %cst_9 = arith.constant 0.000000e+00 : f32
      %15 = vector.broadcast %cst_9 : f32 to vector<128x128xf32>
      %c0_10 = arith.constant 0 : index
      %c0_11 = arith.constant 0 : index
      %16 = vector.load %arg8[%c0_10, %c0_11] : memref<128x128xf32, #tpu.memory_space<vmem>>, vector<128x128xf32>
      tpu.vector_store %arg8[%c0_10, %c0_11], %15 {strides = array<i32>} : memref<128x128xf32, #tpu.memory_space<vmem>>, vector<128x128xf32>,
    } else {
    }
    %c128_i32 = arith.constant 128 : i32
    %3 = arith.muli %arg1, %c128_i32 : i32
    %4 = tpu.assume_multiple %3, 128 : i32
    %5 = arith.index_cast %4 : i32 to index
    %c0 = arith.constant 0 : index
    %6 = vector.load %arg3[%5, %c0] : memref<128x128xbf16, #tpu.memory_space<vmem>>, vector<128x128xbf16>
    %c0_1 = arith.constant 0 : index
    %c0_2 = arith.constant 0 : index
    %7 = vector.load %arg8[%c0_1, %c0_2] : memref<128x128xf32, #tpu.memory_space<vmem>>, vector<128x128xf32>
    %c0_3 = arith.constant 0 : index
    %c0_4 = arith.constant 0 : index
    %8 = vector.load %arg2[%c0_3, %c0_4] : memref<128x128xbf16, #tpu.memory_space<vmem>>, vector<128x128xbf16>
    %cst = arith.constant dense<0.000000e+00> : vector<128x128xf32>
    %9 = tpu.matmul %8, %6, %cst {dimension_numbers = #tpu.dot_dimension_numbers<[1], [0], [0], [1], [0, 0, 1, 1], [], []>} : vector<128x128xbf16>, vector<128x128xbf16>, vector<128x128xf32> -> vector<128x128xf32>
    %10 = arith.addf %7, %9 : vector<128x128xf32>
    %c0_5 = arith.constant 0 : index
    %c0_6 = arith.constant 0 : index
    %11 = vector.load %arg8[%c0_5, %c0_6] : memref<128x128xf32, #tpu.memory_space<vmem>>, vector<128x128xf32>
    tpu.vector_store %arg8[%c0_5, %c0_6], %10 {strides = array<i32>} : memref<128x128xf32, #tpu.memory_space<vmem>>, vector<128x128xf32>,
    %c0_i32_7 = arith.constant 0 : i32
    %12 = arith.cmpi eq, %arg1, %c0_i32_7 : i32
    %13 = arith.extui %12 : i1 to i32
    %c0_i32_8 = arith.constant 0 : i32
    %14 = arith.cmpi ne, %13, %c0_i32_8 : i32
    scf.if %14 {
      %c0_9 = arith.constant 0 : index
      %c0_10 = arith.constant 0 : index
      %15 = vector.load %arg8[%c0_9, %c0_10] : memref<128x128xf32, #tpu.memory_space<vmem>>, vector<128x128xf32>
      %16 = arith.truncf %15 : vector<128x128xf32> to vector<128x128xbf16>
      %c0_11 = arith.constant 0 : index
      %c0_12 = arith.constant 0 : index
      %17 = vector.load %arg4[%c0_11, %c0_12] : memref<128x128xbf16, #tpu.memory_space<vmem>>, vector<128x128xbf16>
      %cst_13 = arith.constant dense<0.000000e+00> : vector<128x128xf32>
      %18 = tpu.matmul %16, %17, %cst_13 {dimension_numbers = #tpu.dot_dimension_numbers<[1], [0], [0], [1], [0, 0, 1, 1], [], []>} : vector<128x128xbf16>, vector<128x128xbf16>, vector<128x128xf32> -> vector<128x128xf32>
      %c0_14 = arith.constant 0 : index
      %c0_15 = arith.constant 0 : index
      %19 = vector.load %arg5[%c0_14, %c0_15] : memref<1x128xf32, #tpu.memory_space<vmem>>, vector<1x128xf32>
      %20 = vector.broadcast %19 : vector<1x128xf32> to vector<128x128xf32>
      %21 = arith.addf %18, %20 : vector<128x128xf32>
      %cst_16 = arith.constant 0.000000e+00 : f32
      %22 = vector.broadcast %cst_16 : f32 to vector<128x128xf32>
      %23 = arith.maximumf %21, %22 : vector<128x128xf32>
      %24 = arith.truncf %23 : vector<128x128xf32> to vector<128x128xbf16>
      %c0_17 = arith.constant 0 : index
      %c0_18 = arith.constant 0 : index
      %25 = vector.load %arg6[%c0_17, %c0_18] : memref<128x128xbf16, #tpu.memory_space<vmem>>, vector<128x128xbf16>
      %cst_19 = arith.constant dense<0.000000e+00> : vector<128x128xf32>
      %26 = tpu.matmul %24, %25, %cst_19 {dimension_numbers = #tpu.dot_dimension_numbers<[1], [0], [0], [1], [0, 0, 1, 1], [], []>} : vector<128x128xbf16>, vector<128x128xbf16>, vector<128x128xf32> -> vector<128x128xf32>
      %27 = arith.truncf %26 : vector<128x128xf32> to vector<128x128xbf16>
      %c0_20 = arith.constant 0 : index
      %c0_21 = arith.constant 0 : index
      %28 = vector.load %arg7[%c0_20, %c0_21] : memref<128x128xbf16, #tpu.memory_space<vmem>>, vector<128x128xbf16>
      tpu.vector_store %arg7[%c0_20, %c0_21], %27 {strides = array<i32>} : memref<128x128xbf16, #tpu.memory_space<vmem>>, vector<128x128xbf16>,
    } else {
    }
    return
  }
  func.func @transform_0(%arg0: i32, %arg1: i32) -> (i32, i32) {
    %c0_i32 = arith.constant 0 : i32
    return %arg0, %arg1 : i32, i32
  }
  func.func @transform_1(%arg0: i32, %arg1: i32) -> (i32, i32) {
    %c0_i32 = arith.constant 0 : i32
    %c0_i32_0 = arith.constant 0 : i32
    %c0_i32_1 = arith.constant 0 : i32
    return %c0_i32, %c0_i32_0 : i32, i32
  }
  func.func @transform_2(%arg0: i32, %arg1: i32) -> (i32, i32) {
    %c0_i32 = arith.constant 0 : i32
    %c0_i32_0 = arith.constant 0 : i32
    %c0_i32_1 = arith.constant 0 : i32
    return %c0_i32, %c0_i32_0 : i32, i32
  }
  func.func @transform_3(%arg0: i32, %arg1: i32) -> (i32, i32) {
    %c0_i32 = arith.constant 0 : i32
    %c0_i32_0 = arith.constant 0 : i32
    %c0_i32_1 = arith.constant 0 : i32
    return %c0_i32, %c0_i32_0 : i32, i32
  }
  func.func @transform_4(%arg0: i32, %arg1: i32) -> (i32, i32) {
    %c0_i32 = arith.constant 0 : i32
    %c0_i32_0 = arith.constant 0 : i32
    %c0_i32_1 = arith.constant 0 : i32
    return %c0_i32, %c0_i32_0 : i32, i32
  }
  func.func @transform_5(%arg0: i32, %arg1: i32) -> (i32, i32) {
    %c0_i32 = arith.constant 0 : i32
    %c0_i32_0 = arith.constant 0 : i32
    return %arg0, %c0_i32 : i32, i32
  }
}

</mosaic_0001>

<bundles_post_ra>
// kernel: tpu_custom_call.1
= control target key start
LH: loop header
LB: loop body
LE: loop exit
PB: predicated region body
PF: predicated region fallthrough
CT: control target
= control target key end

     0   :  { %10 = vsyncpa [#allocation4], 0  ;;  %s1107_s0 = inlined_call_operand.hbm [shape: bf16[128,128], index: 0, kind: input, shape index: {}]   ;;  %s1108_s1 = inlined_call_operand.hbm [shape: bf16[128,128], index: 1, kind: input, shape index: {}]   ;;  %s1109_s2 = inlined_call_operand.hbm [shape: bf16[128,128], index: 2, kind: input, shape index: {}]   ;;  %s1110_s3 = inlined_call_operand.vmem [shape: f32[1,128], index: 3, kind: input, shape index: {}]   ;;  %s1111_s4 = inlined_call_operand.hbm [shape: bf16[128,128], index: 4, kind: input, shape index: {}]   ;;  %s1112_s5 = inlined_call_operand.hbm [shape: bf16[128,128], index: 5, kind: output, shape index: {}]  }
   0x1   :  { %11 = vsyncpa [#allocation7], 0 }
   0x2   :  { %12 = vsyncpa [#allocation10], 0 }
   0x3   :  { %13 = vsyncpa [#allocation5], 0  ;;  %s31_s20 = sshll.u32 %s1108_s1, 4  ;;  %s1037_s21 = smov [#allocation6]   ;;  %s32_s20 = int_to_ptr.hbm [resolvable:$true] %s31_s20 }
   0x4   :  { %s33_s22 = sshll.u32 %s1037_s21, 4  ;;  %s18_s25 = sshll.u32 %s1107_s0, 4  ;;  %s34_s22 = int_to_ptr.vmem [resolvable:$true] %s33_s22  ;;  %s19_s25 = int_to_ptr.hbm [resolvable:$true] %s18_s25 }
   0x5   :  { %s1038_s26 = smov 64   ;;  %s1039_s27 = smov 4  }
   0x6   :  { %39 = dma.hbm_to_vmem [thread:$0]  %s32_s20, 1024, %s34_s22, [#allocation7], %s1038_s26, %s1038_s26, %s1039_s27  }
   0x7   :  { %s1040_s28 = smov [#allocation3]   ;;  %s44_s1 = sshll.u32 %s1109_s2, 4  ;;  %s45_s1 = int_to_ptr.hbm [resolvable:$true] %s44_s1 }
   0x8   :  { %s20_s29 = sshll.u32 %s1040_s28, 4  ;;  %s59_s8 = sshll.u32 %s1111_s4, 4  ;;  %s21_s29 = int_to_ptr.vmem [resolvable:$true] %s20_s29  ;;  %s60_s8 = int_to_ptr.hbm [resolvable:$true] %s59_s8 }
   0x9   :  { %26 = dma.hbm_to_vmem [thread:$0]  %s19_s25, 1024, %s21_s29, [#allocation4], %s1038_s26, %s1038_s26, %s1039_s27  }
   0xa   :  { %s1041_s9 = smov [#allocation8]   ;;  %s1042_s11 = smov [#allocation9]  }
   0xb   :  { %s46_s10 = sshll.u32 %s1041_s9, 4  ;;  %s61_s2 = sshll.u32 %s1042_s11, 4  ;;  %s47_s10 = int_to_ptr.vmem [resolvable:$true] %s46_s10  ;;  %s62_s2 = int_to_ptr.vmem [resolvable:$true] %s61_s2 }
   0xc   :  { %52 = dma.hbm_to_vmem [thread:$0]  %s45_s1, 1024, %s47_s10, [#allocation7], %s1038_s26, %s1038_s26, %s1039_s27  }
   0xd   :  { %67 = dma.hbm_to_vmem [thread:$0]  %s60_s8, 1024, %s62_s2, [#allocation10], %s1038_s26, %s1038_s26, %s1039_s27  }
   0xe   :  { %1029 = dma.done.wait [#allocation4], 1024  }
   0xf   :  { %1030 = vsyncadd [#allocation4], 4294966272 }
  0x10   :  { %1031 = dma.done.wait [#allocation7], 2048  }
  0x11   :  { %1032 = vsyncadd [#allocation7], 4294965248 }
  0x12   :  { %1033 = dma.done.wait [#allocation10], 1024  }
  0x13   :  { %1034 = vsyncadd [#allocation10], 4294966272  ;;  %v805_v0 = vld [vmem:[#allocation6 + $0x38] sm:$0xff]  ;;  %v804_v1 = vld [vmem:[#allocation6 + $0x30] sm:$0xff]  ;;  %s653_s16 = sshll.u32 %s1112_s5, 4  ;;  %s654_s16 = int_to_ptr.hbm [resolvable:$true] %s653_s16 }
  0x14   :  { %253 = vmatpush.bf16.msra.mxu0 %v805_v0  ;;  %877 = vmatpush.bf16.msra.mxu3 %v805_v0  ;;  %v803_v2 = vld [vmem:[#allocation6 + $0x28] sm:$0xff]  ;;  %v802_v3 = vld [vmem:[#allocation6 + $0x20] sm:$0xff]  ;;  %v801_v4 = vld [vmem:[#allocation6 + $0x18] sm:$0xff] }
  0x15   :  { %v800_v5 = vld [vmem:[#allocation6 + $0x10] sm:$0xff]  ;;  %v799_v6 = vld [vmem:[#allocation6 + $0x8] sm:$0xff]  ;;  %v798_v7 = vld [vmem:[#allocation6] sm:$0xff] }
  0x16   :  { %v806_v8 = vld [vmem:[#allocation3] sm:$0xff]  ;;  %v812_v9 = vld [vmem:[#allocation3 + $0x30] sm:$0xff]  ;;  %v807_v10 = vld [vmem:[#allocation3 + $0x8] sm:$0xff] }
  0x17   :  { %v813_v11 = vld [vmem:[#allocation3 + $0x38] sm:$0xff]  ;;  %v808_v12 = vld [vmem:[#allocation3 + $0x10] sm:$0xff]  ;;  %v819_v16 = vld [vmem:[#allocation8 + $0x28] sm:$0xff] }
  0x18   :  { %254 = vmatpush.bf16.msra.mxu0 %v804_v1  ;;  %878 = vmatpush.bf16.msra.mxu3 %v804_v1  ;;  %v809_v13 = vld [vmem:[#allocation3 + $0x18] sm:$0xff]  ;;  %v820_v15 = vld [vmem:[#allocation8 + $0x30] sm:$0xff]  ;;  %v818_v17 = vld [vmem:[#allocation8 + $0x20] sm:$0xff] }
  0x19   :  { %v821_v14 = vld [vmem:[#allocation8 + $0x38] sm:$0xff]  ;;  %v810_v18 = vld [vmem:[#allocation3 + $0x20] sm:$0xff]  ;;  %v811_v20 = vld [vmem:[#allocation3 + $0x28] sm:$0xff] }
  0x1a   :  { %429 = vmatpush.bf16.msra.mxu1 %v821_v14  ;;  %v817_v19 = vld [vmem:[#allocation8 + $0x18] sm:$0xff]  ;;  %v816_v21 = vld [vmem:[#allocation8 + $0x10] sm:$0xff]  ;;  %v815_v22 = vld [vmem:[#allocation8 + $0x8] sm:$0xff] }
  0x1b   :  { %v814_v23 = vld [vmem:[#allocation8] sm:$0xff]  ;;  %v829_v42 = vld [vmem:[#allocation9 + $0x38] sm:$0xff]  ;;  %v828_v43 = vld [vmem:[#allocation9 + $0x30] sm:$0xff] }
  0x1c   :  { %255 = vmatpush.bf16.msra.mxu0 %v803_v2  ;;  %879 = vmatpush.bf16.msra.mxu3 %v803_v2  ;;  %v827_v45 = vld [vmem:[#allocation9 + $0x28] sm:$0xff]  ;;  %v826_v46 = vld [vmem:[#allocation9 + $0x20] sm:$0xff]  ;;  %v825_v52 = vld [vmem:[#allocation9 + $0x18] sm:$0xff] }
  0x1d   :  { %566 = vmatpush.bf16.msra.mxu2 %v829_v42  ;;  %v824_v53 = vld [vmem:[#allocation9 + $0x10] sm:$0xff]  ;;  %v823_v54 = vld [vmem:[#allocation9 + $0x8] sm:$0xff]  ;;  %v822_v55 = vld [vmem:[#allocation9] sm:$0xff] }
  0x1e   :  { %430 = vmatpush.bf16.msra.mxu1 %v820_v15  ;;  %v908_v57 = vld [vmem:[%s1110_s3] ss:$0 sm:$0xff]  ;;  %s1043_s3 = smov [#allocation11]  }
  0x1f   :  { %s651_s13 = sshll.u32 %s1043_s3, 4  ;;  %s652_s13 = int_to_ptr.vmem [resolvable:$true] %s651_s13 }
  0x20   :  { %256 = vmatpush.bf16.msra.mxu0 %v802_v3  ;;  %880 = vmatpush.bf16.msra.mxu3 %v802_v3 }
  0x21   :  { %567 = vmatpush.bf16.msra.mxu2 %v828_v43 }
  0x22   :  { %431 = vmatpush.bf16.msra.mxu1 %v819_v16 }
  0x24   :  { %257 = vmatpush.bf16.msra.mxu0 %v801_v4  ;;  %881 = vmatpush.bf16.msra.mxu3 %v801_v4 }
  0x25   :  { %568 = vmatpush.bf16.msra.mxu2 %v827_v45 }
  0x26   :  { %432 = vmatpush.bf16.msra.mxu1 %v818_v17 }
  0x28   :  { %258 = vmatpush.bf16.msra.mxu0 %v800_v5  ;;  %882 = vmatpush.bf16.msra.mxu3 %v800_v5 }
  0x29   :  { %569 = vmatpush.bf16.msra.mxu2 %v826_v46 }
  0x2a   :  { %433 = vmatpush.bf16.msra.mxu1 %v817_v19 }
  0x2c   :  { %259 = vmatpush.bf16.msra.mxu0 %v799_v6  ;;  %883 = vmatpush.bf16.msra.mxu3 %v799_v6 }
  0x2d   :  { %570 = vmatpush.bf16.msra.mxu2 %v825_v52 }
  0x2e   :  { %434 = vmatpush.bf16.msra.mxu1 %v816_v21 }
  0x30   :  { %260 = vmatpush.bf16.msra.mxu0 %v798_v7  ;;  %884 = vmatpush.bf16.msra.mxu3 %v798_v7 }
  0x31   :  { %571 = vmatpush.bf16.msra.mxu2 %v824_v53 }
  0x32   :  { %435 = vmatpush.bf16.msra.mxu1 %v815_v22 }
  0x33   :  { %261 = vmatmul.bf16.vlgmr.msra.gmra.mxu0 %v806_v8  ;;  %291 = vmatmul.bf16.vlgmr.msra.gmra.mxu3 %v812_v9 }
  0x34   :  { %885 = vmatpush.bf16.msrb.mxu3 %v821_v14 }
  0x35   :  { %572 = vmatpush.bf16.msra.mxu2 %v823_v54 }
  0x36   :  { %436 = vmatpush.bf16.msra.mxu1 %v814_v23 }
  0x38   :  { %886 = vmatpush.bf16.msrb.mxu3 %v820_v15 }
  0x39   :  { %573 = vmatpush.bf16.msra.mxu2 %v822_v55 }
  0x3c   :  { %887 = vmatpush.bf16.msrb.mxu3 %v819_v16 }
  0x40   :  { %888 = vmatpush.bf16.msrb.mxu3 %v818_v17 }
  0x43   :  { %266 = vmatmul.bf16.gmra.mxu0 %v807_v10  ;;  %296 = vmatmul.bf16.gmra.mxu3 %v813_v11 }
  0x44   :  { %889 = vmatpush.bf16.msrb.mxu3 %v817_v19 }
  0x48   :  { %890 = vmatpush.bf16.msrb.mxu3 %v816_v21 }
  0x4c   :  { %891 = vmatpush.bf16.msrb.mxu3 %v815_v22 }
  0x50   :  { %892 = vmatpush.bf16.msrb.mxu3 %v814_v23 }
  0x53   :  { %271 = vmatmul.bf16.gmra.mxu0 %v808_v12 }
  0x54   :  { %893 = vmatpush.bf16.msra.mxu3 %v829_v42 }
  0x58   :  { %894 = vmatpush.bf16.msra.mxu3 %v828_v43 }
  0x5c   :  { %895 = vmatpush.bf16.msra.mxu3 %v827_v45 }
  0x60   :  { %896 = vmatpush.bf16.msra.mxu3 %v826_v46 }
  0x63   :  { %276 = vmatmul.bf16.gmra.mxu0 %v809_v13 }
  0x64   :  { %897 = vmatpush.bf16.msra.mxu3 %v825_v52 }
  0x68   :  { %898 = vmatpush.bf16.msra.mxu3 %v824_v53 }
  0x6c   :  { %899 = vmatpush.bf16.msra.mxu3 %v823_v54 }
  0x70   :  { %900 = vmatpush.bf16.msra.mxu3 %v822_v55 }
  0x73   :  { %281 = vmatmul.bf16.gmra.mxu0 %v810_v18 }
  0x83   :  { %286 = vmatmul.bf16.gmra.mxu0 %v811_v20 }
  0xb0   :  { %v262_v24 = vpop.f32.mrf.mxu0 }
  0xb6   :  { %v292_v25 = vpop.f32.mrf.mxu3 }
  0xb8   :  { %v264_v26 = vpop.f32.mrf.mxu0 }
  0xb9   :  { %v353_v27 = vpack.c.bf16 %v264_v26, %v262_v24 }
  0xbb   :  { %437 = vmatmul.bf16.vlgmr.msra.gmra.mxu1 %v353_v27 }
  0xbe   :  { %v294_v28 = vpop.f32.mrf.mxu3 }
  0xbf   :  { %v359_v29 = vpack.c.bf16 %v294_v28, %v292_v25 }
  0xc0   :  { %v267_v30 = vpop.f32.mrf.mxu0 }
  0xc1   :  { %467 = vmatmul.bf16.vlgmr.msrb.gmra.mxu3 %v359_v29 }
  0xc6   :  { %v297_v31 = vpop.f32.mrf.mxu3 }
  0xc8   :  { %v269_v32 = vpop.f32.mrf.mxu0 }
  0xc9   :  { %v354_v33 = vpack.c.bf16 %v269_v32, %v267_v30 }
  0xcb   :  { %442 = vmatmul.bf16.gmra.mxu1 %v354_v33 }
  0xce   :  { %v299_v34 = vpop.f32.mrf.mxu3 }
  0xcf   :  { %v360_v35 = vpack.c.bf16 %v299_v34, %v297_v31 }
  0xd0   :  { %v272_v36 = vpop.f32.mrf.mxu0 }
  0xd1   :  { %472 = vmatmul.bf16.gmra.mxu3 %v360_v35 }
  0xd8   :  { %v274_v37 = vpop.f32.mrf.mxu0 }
  0xd9   :  { %v355_v38 = vpack.c.bf16 %v274_v37, %v272_v36 }
  0xdb   :  { %447 = vmatmul.bf16.gmra.mxu1 %v355_v38 }
  0xe0   :  { %v277_v39 = vpop.f32.mrf.mxu0 }
  0xe8   :  { %v279_v40 = vpop.f32.mrf.mxu0 }
  0xe9   :  { %v356_v41 = vpack.c.bf16 %v279_v40, %v277_v39 }
  0xeb   :  { %452 = vmatmul.bf16.gmra.mxu1 %v356_v41 }
  0xf0   :  { %v282_v44 = vpop.f32.mrf.mxu0 }
  0xf8   :  { %v284_v47 = vpop.f32.mrf.mxu0 }
  0xf9   :  { %v357_v48 = vpack.c.bf16 %v284_v47, %v282_v44 }
  0xfb   :  { %457 = vmatmul.bf16.gmra.mxu1 %v357_v48 }
 0x100   :  { %v287_v49 = vpop.f32.mrf.mxu0 }
 0x108   :  { %v289_v50 = vpop.f32.mrf.mxu0 }
 0x109   :  { %v358_v51 = vpack.c.bf16 %v289_v50, %v287_v49 }
 0x10b   :  { %462 = vmatmul.bf16.gmra.mxu1 %v358_v51 }
 0x138   :  { %v438_v56 = vpop.f32.mrf.mxu1 }
 0x139   :  { %v439_v58 = vadd.f32 %v908_v57, %v438_v56 }
 0x13b   :  { %v478_v61 = vmax.f32 %v439_v58, 0.0 }
 0x140   :  { %v440_v59 = vpop.f32.mrf.mxu1 }
 0x141   :  { %v441_v60 = vadd.f32 %v908_v57, %v440_v59 }
 0x143   :  { %v479_v62 = vmax.f32 %v441_v60, 0.0 }
 0x144   :  { %v468_v63 = vpop.f32.mrf.mxu3 }
 0x145   :  { %v494_v0 = vpack.c.bf16 %v479_v62, %v478_v61  ;;  %v469_v2 = vadd.f32 %v908_v57, %v468_v63 }
 0x147   :  { %574 = vmatmul.bf16.vlgmr.msra.gmra.mxu2 %v494_v0  ;;  %v490_v4 = vmax.f32 %v469_v2, 0.0 }
 0x148   :  { %v443_v1 = vpop.f32.mrf.mxu1 }
 0x149   :  { %v444_v6 = vadd.f32 %v908_v57, %v443_v1 }
 0x14b   :  { %v480_v11 = vmax.f32 %v444_v6, 0.0 }
 0x14c   :  { %v470_v3 = vpop.f32.mrf.mxu3 }
 0x14d   :  { %v471_v5 = vadd.f32 %v908_v57, %v470_v3 }
 0x14f   :  { %v491_v7 = vmax.f32 %v471_v5, 0.0 }
 0x150   :  { %v445_v8 = vpop.f32.mrf.mxu1 }
 0x151   :  { %v446_v9 = vadd.f32 %v908_v57, %v445_v8  ;;  %v500_v10 = vpack.c.bf16 %v491_v7, %v490_v4 }
 0x153   :  { %v481_v12 = vmax.f32 %v446_v9, 0.0  ;;  %604 = vmatmul.bf16.vlgmr.msra.gmra.mxu3 %v500_v10 }
 0x154   :  { %v473_v13 = vpop.f32.mrf.mxu3 }
 0x155   :  { %v495_v14 = vpack.c.bf16 %v481_v12, %v480_v11  ;;  %v474_v16 = vadd.f32 %v908_v57, %v473_v13 }
 0x157   :  { %579 = vmatmul.bf16.gmra.mxu2 %v495_v14  ;;  %v492_v18 = vmax.f32 %v474_v16, 0.0 }
 0x158   :  { %v448_v15 = vpop.f32.mrf.mxu1 }
 0x159   :  { %v449_v20 = vadd.f32 %v908_v57, %v448_v15 }
 0x15b   :  { %v482_v25 = vmax.f32 %v449_v20, 0.0 }
 0x15c   :  { %v475_v17 = vpop.f32.mrf.mxu3 }
 0x15d   :  { %v476_v19 = vadd.f32 %v908_v57, %v475_v17 }
 0x15f   :  { %v493_v21 = vmax.f32 %v476_v19, 0.0 }
 0x160   :  { %v450_v22 = vpop.f32.mrf.mxu1 }
 0x161   :  { %v451_v23 = vadd.f32 %v908_v57, %v450_v22  ;;  %v501_v24 = vpack.c.bf16 %v493_v21, %v492_v18 }
 0x163   :  { %v483_v26 = vmax.f32 %v451_v23, 0.0  ;;  %609 = vmatmul.bf16.gmra.mxu3 %v501_v24 }
 0x165   :  { %v496_v27 = vpack.c.bf16 %v483_v26, %v482_v25 }
 0x167   :  { %584 = vmatmul.bf16.gmra.mxu2 %v496_v27 }
 0x168   :  { %v453_v28 = vpop.f32.mrf.mxu1 }
 0x169   :  { %v454_v29 = vadd.f32 %v908_v57, %v453_v28 }
 0x16b   :  { %v484_v32 = vmax.f32 %v454_v29, 0.0 }
 0x170   :  { %v455_v30 = vpop.f32.mrf.mxu1 }
 0x171   :  { %v456_v31 = vadd.f32 %v908_v57, %v455_v30 }
 0x173   :  { %v485_v33 = vmax.f32 %v456_v31, 0.0 }
 0x175   :  { %v497_v34 = vpack.c.bf16 %v485_v33, %v484_v32 }
 0x177   :  { %589 = vmatmul.bf16.gmra.mxu2 %v497_v34 }
 0x178   :  { %v458_v35 = vpop.f32.mrf.mxu1 }
 0x179   :  { %v459_v36 = vadd.f32 %v908_v57, %v458_v35 }
 0x17b   :  { %v486_v39 = vmax.f32 %v459_v36, 0.0 }
 0x180   :  { %v460_v37 = vpop.f32.mrf.mxu1 }
 0x181   :  { %v461_v38 = vadd.f32 %v908_v57, %v460_v37 }
 0x183   :  { %v487_v40 = vmax.f32 %v461_v38, 0.0 }
 0x185   :  { %v498_v41 = vpack.c.bf16 %v487_v40, %v486_v39 }
 0x187   :  { %594 = vmatmul.bf16.gmra.mxu2 %v498_v41 }
 0x188   :  { %v463_v42 = vpop.f32.mrf.mxu1 }
 0x189   :  { %v464_v43 = vadd.f32 %v908_v57, %v463_v42 }
 0x18b   :  { %v488_v46 = vmax.f32 %v464_v43, 0.0 }
 0x190   :  { %v465_v44 = vpop.f32.mrf.mxu1 }
 0x191   :  { %v466_v45 = vadd.f32 %v908_v57, %v465_v44 }
 0x193   :  { %v489_v47 = vmax.f32 %v466_v45, 0.0 }
 0x195   :  { %v499_v48 = vpack.c.bf16 %v489_v47, %v488_v46 }
 0x197   :  { %599 = vmatmul.bf16.gmra.mxu2 %v499_v48 }
 0x1ca   :  { %v575_v49 = vpop.f32.mrf.mxu2 }
 0x1d2   :  { %v577_v50 = vpop.f32.mrf.mxu2 }
 0x1d3   :  { %v833_v51 = vpack.c.bf16 %v577_v50, %v575_v49 }
 0x1d5   :  { %834 = vst [vmem:[#allocation11] sm:$0xff] %v833_v51  }
 0x1d6   :  { %v605_v52 = vpop.f32.mrf.mxu3 }
 0x1da   :  { %v580_v53 = vpop.f32.mrf.mxu2 }
 0x1de   :  { %v607_v54 = vpop.f32.mrf.mxu3 }
 0x1df   :  { %v863_v55 = vpack.c.bf16 %v607_v54, %v605_v52 }
 0x1e1   :  { %875 = vst [vmem:[#allocation11 + $0x30] sm:$0xff] %v863_v55  }
 0x1e2   :  { %v582_v56 = vpop.f32.mrf.mxu2 }
 0x1e3   :  { %v838_v58 = vpack.c.bf16 %v582_v56, %v580_v53 }
 0x1e5   :  { %870 = vst [vmem:[#allocation11 + $0x8] sm:$0xff] %v838_v58  }
 0x1e6   :  { %v610_v59 = vpop.f32.mrf.mxu3 }
 0x1ea   :  { %v585_v60 = vpop.f32.mrf.mxu2 }
 0x1ee   :  { %v612_v61 = vpop.f32.mrf.mxu3 }
 0x1ef   :  { %v868_v57 = vpack.c.bf16 %v612_v61, %v610_v59 }
 0x1f1   :  { %876 = vst [vmem:[#allocation11 + $0x38] sm:$0xff] %v868_v57  }
 0x1f2   :  { %v587_v62 = vpop.f32.mrf.mxu2 }
 0x1f3   :  { %v843_v63 = vpack.c.bf16 %v587_v62, %v585_v60 }
 0x1f5   :  { %871 = vst [vmem:[#allocation11 + $0x10] sm:$0xff] %v843_v63  }
 0x1fa   :  { %v590_v0 = vpop.f32.mrf.mxu2 }
 0x202   :  { %v592_v1 = vpop.f32.mrf.mxu2 }
 0x203   :  { %v848_v2 = vpack.c.bf16 %v592_v1, %v590_v0 }
 0x205   :  { %872 = vst [vmem:[#allocation11 + $0x18] sm:$0xff] %v848_v2  }
 0x20a   :  { %v595_v3 = vpop.f32.mrf.mxu2 }
 0x212   :  { %v597_v4 = vpop.f32.mrf.mxu2 }
 0x213   :  { %v853_v5 = vpack.c.bf16 %v597_v4, %v595_v3 }
 0x215   :  { %873 = vst [vmem:[#allocation11 + $0x20] sm:$0xff] %v853_v5  }
 0x21a   :  { %v600_v6 = vpop.f32.mrf.mxu2 }
 0x222   :  { %v602_v7 = vpop.f32.mrf.mxu2 }
 0x223   :  { %v858_v8 = vpack.c.bf16 %v602_v7, %v600_v6 }
 0x225   :  { %874 = vst [vmem:[#allocation11 + $0x28] sm:$0xff] %v858_v8  }
 0x226   :  { %659 = dma.vmem_to_hbm [thread:$0]  %s652_s13, 1024, %s654_s16, [#allocation5], %s1038_s26, %s1038_s26, %s1039_s27  }
 0x227   :  { %1035 = dma.done.wait [#allocation5], 1024  }
 0x228   :  { %1036 = vsyncadd [#allocation5], 4294966272 }
 0x229   :  { %664 = vsyncpa [#allocation4], 1 }
 0x22a   :  { %665 = vsyncpa [#allocation7], 1 }
 0x22b   :  { %666 = vsyncpa [#allocation10], 1 }
 0x22c   :  { %667 = vsyncpa [#allocation5], 1 }

</bundles_post_ra>
